<compile_context>
chip_gen: v7x
topology: tpu7x:2x2x1
jax: 0.10.0
libtpu: 0.0.40
codegen_flags: <defaults>
</compile_context>

<pallas_src>
import math

import jax
import jax.numpy as jnp
from jax import lax
from jax.experimental import pallas as pl
from jax.experimental.pallas import tpu as pltpu


def _round_up(v, m):
    return (v + m - 1) // m * m


def _rslora_kernel(x_ref, wt_ref, ya_ref, b_ref, bias_ref, o_ref, acc_ref):
    """out = x @ W.T + ya @ (scale*B).T + bias, accumulated over K.

    ya = x @ A.T is precomputed outside the kernel (it is independent of the
    N tile, so recomputing it per (j, k) step wastes a full MXU pass).  W is
    pre-transposed to (K, N) so the dense contraction is MXU-native.
    """
    k = pl.program_id(2)

    @pl.when(k == 0)
    def _():
        acc_ref[...] = jnp.zeros_like(acc_ref)

    acc_ref[...] += lax.dot_general(
        x_ref[...], wt_ref[...],
        dimension_numbers=(((1,), (0,)), ((), ())),
        preferred_element_type=jnp.float32)                    # (tm, tn)

    @pl.when(k == pl.num_programs(2) - 1)
    def _():
        lora = lax.dot_general(
            ya_ref[...], b_ref[...],
            dimension_numbers=(((1,), (1,)), ((), ())),
            preferred_element_type=jnp.float32)                # (tm, tn)
        out = acc_ref[...] + lora + bias_ref[...].astype(jnp.float32)
        o_ref[...] = out.astype(o_ref.dtype)


def prepare_rslora_params(weight, A, B, bias=None, *, alpha, r, tn=512, tk=1024):
    """One-time (per-parameter-set) padding / transpose / scale folding.

    Done outside the per-call forward so weight padding is not repeated HBM
    traffic on every forward pass.
    """
    out_features, in_features = weight.shape
    assert A.shape == (r, in_features)
    assert B.shape == (out_features, r)

    # Tile sizes for the N/K axes: prefer 256-multiples (v6e/v7x MXU is
    # 2x256x256); fall back to 128 only when the padded dim itself is small.
    Np_min = _round_up(out_features, 128)
    Kp_min = _round_up(in_features, 128)
    tn = min(tn, Np_min)
    tk = min(tk, Kp_min)
    if tn >= 256:
        tn = (tn // 256) * 256
    if tk >= 256:
        tk = (tk // 256) * 256
    Np = _round_up(out_features, tn)
    Kp = _round_up(in_features, tk)

    def pad2(a, rows, cols):
        pr, pc = rows - a.shape[0], cols - a.shape[1]
        return a if (pr == 0 and pc == 0) else jnp.pad(a, ((0, pr), (0, pc)))

    scale = float(alpha) / math.sqrt(float(r))
    wt = pad2(weight.T, Kp, Np)                                  # (Kp, Np)
    b_scaled = pad2(B * jnp.asarray(scale, dtype=B.dtype), Np, r)  # (Np, r)
    if bias is None:
        bias = jnp.zeros((out_features,), dtype=weight.dtype)
    bias_p = pad2(bias.reshape(1, out_features), 1, Np)          # (1, Np)

    # TODO(synk): optionally cast wt/x to bf16 (keeping the f32 accumulator)
    # for 2-4x MXU throughput when numerically acceptable.
    return dict(wt=wt, A=A, b_scaled=b_scaled, bias=bias_p,
                out_features=out_features, in_features=in_features,
                r=r, tn=tn, tk=tk, Np=Np, Kp=Kp)


def rslora_linear(x, params, *, tm=512):
    """x: (..., in_features) -> (..., out_features)."""
    in_features = params["in_features"]
    out_features = params["out_features"]
    r = params["r"]
    tn, tk = params["tn"], params["tk"]
    Np, Kp = params["Np"], params["Kp"]
    wt, A = params["wt"], params["A"]
    b_scaled, bias_p = params["b_scaled"], params["bias"]

    assert x.shape[-1] == in_features
    lead = x.shape[:-1]
    M = math.prod(lead) if lead else 1
    x2 = x.reshape(M, in_features)

    tm = min(tm, _round_up(M, 8))
    Mp = _round_up(M, tm)

    # v7x has 2 TensorCores: if the M axis yields a single parallel block,
    # split the N axis so at least two parallel blocks exist.
    if Mp // tm == 1 and Np // tn == 1 and tn >= 256 and (tn // 2) % 128 == 0:
        tn = tn // 2

    # Only the activation edge is padded per call (weights padded in prepare).
    if Mp == M and Kp == in_features:
        xp = x2
    else:
        xp = jnp.pad(x2, ((0, Mp - M), (0, Kp - in_features)))

    # LoRA down-projection hoisted out of the hot loop: tiny (M, r) matmul.
    ya = (x2 @ A.T).astype(b_scaled.dtype)
    if Mp != M:
        ya = jnp.pad(ya, ((0, Mp - M), (0, 0)))

    grid = (Mp // tm, Np // tn, Kp // tk)

    # VMEM budget: 2x each double-buffered input block + 2x output block +
    # f32 accumulator scratch, capped per generation.
    esz = lambda a: jnp.dtype(a.dtype).itemsize
    vmem_est = (2 * (tm * tk * esz(xp) + tk * tn * esz(wt)
                     + tm * r * esz(ya) + tn * r * esz(b_scaled)
                     + tn * esz(bias_p))
                + 2 * tm * tn * esz(x) + tm * tn * 4)
    try:
        phys_vmem = pltpu.get_tpu_info().vmem_capacity_bytes
    except Exception:
        phys_vmem = 64 * 1024 * 1024        # v7x per-TC (most constrained)
    vmem_limit = int(min(max(32 * 1024 * 1024, 2 * vmem_est),
                         int(0.75 * phys_vmem)))
    vmem_limit = int(max(vmem_limit, int(1.25 * vmem_est)))

    out = pl.pallas_call(
        _rslora_kernel,
        out_shape=jax.ShapeDtypeStruct((Mp, Np), x.dtype),
        grid_spec=pltpu.PrefetchScalarGridSpec(
            num_scalar_prefetch=0,
            grid=grid,
            in_specs=[
                pl.BlockSpec((tm, tk), lambda i, j, k: (i, k)),   # x
                pl.BlockSpec((tk, tn), lambda i, j, k: (k, j)),   # W.T (K, N)
                pl.BlockSpec((tm, r), lambda i, j, k: (i, 0)),    # ya = x @ A.T
                pl.BlockSpec((tn, r), lambda i, j, k: (j, 0)),    # scale * B
                pl.BlockSpec((1, tn), lambda i, j, k: (0, j)),    # bias
            ],
            out_specs=pl.BlockSpec((tm, tn), lambda i, j, k: (i, j)),
            scratch_shapes=[pltpu.VMEM((tm, tn), jnp.float32)],   # f32 acc
        ),
        compiler_params=pltpu.CompilerParams(
            dimension_semantics=("parallel", "parallel", "arbitrary"),
            vmem_limit_bytes=vmem_limit,
        ),
    )(xp, wt, ya, b_scaled, bias_p)

    out = out[:M, :out_features]
    return out.reshape(*lead, out_features)


if __name__ == "__main__":
    # Small shapes consistent with the module's forward.
    batch, seq = 2, 8
    in_features, out_features = 32, 64
    r, alpha = 8, 16.0

    key = jax.random.PRNGKey(0)
    k_x, k_w, k_b, k_a, k_bb = jax.random.split(key, 5)

    # Deterministic synthetic parameter init (shapes match nn.Module.__init__):
    #   weight ~ kaiming_uniform-like, bias ~ U(-bound, bound), A ~ 0.01*N(0,1).
    bound_w = math.sqrt(6.0 / in_features) / math.sqrt(1.0 + 5.0)
    weight = jax.random.uniform(k_w, (out_features, in_features),
                                minval=-bound_w, maxval=bound_w,
                                dtype=jnp.float32)
    bound_b = 1.0 / math.sqrt(in_features)
    bias = jax.random.uniform(k_b, (out_features,),
                              minval=-bound_b, maxval=bound_b, dtype=jnp.float32)
    A = 0.01 * jax.random.normal(k_a, (r, in_features), dtype=jnp.float32)
    # B is zeros at init in the module; use small values so the LoRA path is
    # actually exercised by the check.
    B = 0.1 * jax.random.normal(k_bb, (out_features, r), dtype=jnp.float32)

    x = jax.random.normal(k_x, (batch, seq, in_features), dtype=jnp.float32)

    params = prepare_rslora_params(weight, A, B, bias, alpha=alpha, r=r)
    out = rslora_linear(x, params)
    out = jax.block_until_ready(out)

    # Reference check in plain JAX (forms w_eff explicitly, like PyTorch).
    w_eff = weight + (alpha / math.sqrt(r)) * (B @ A)
    ref = x @ w_eff.T + bias
    assert out.shape == (batch, seq, out_features)
    assert jnp.allclose(out, ref, atol=1e-4, rtol=1e-4), float(
        jnp.max(jnp.abs(out - ref)))

    print("KERNEL_OK")
</pallas_src>

<mosaic_0001>
module attributes {stable_mosaic.version = 11 : i64} {
  func.func @_rslora_kernel(%arg0: i32, %arg1: i32, %arg2: i32, %arg3: memref<16x128xf32, #tpu.memory_space<vmem>>, %arg4: memref<128x128xf32, #tpu.memory_space<vmem>>, %arg5: memref<16x8xf32, #tpu.memory_space<vmem>>, %arg6: memref<128x8xf32, #tpu.memory_space<vmem>>, %arg7: memref<1x128xf32, #tpu.memory_space<vmem>>, %arg8: memref<16x128xf32, #tpu.memory_space<vmem>>, %arg9: memref<16x128xf32, #tpu.memory_space<vmem>>) attributes {dimension_semantics = [#tpu.dimension_semantics<parallel>, #tpu.dimension_semantics<parallel>, #tpu.dimension_semantics<arbitrary>], iteration_bounds = array<i64: 1, 1, 1>, scalar_prefetch = 0 : i64, scratch_operands = 1 : i64, tpu.core_type = #tpu.core_type<tc>, window_params = [{transform_indices = @transform_0, window_bounds = array<i64: 16, 128>}, {transform_indices = @transform_1, window_bounds = array<i64: 128, 128>}, {transform_indices = @transform_2, window_bounds = array<i64: 16, 8>}, {transform_indices = @transform_3, window_bounds = array<i64: 128, 8>}, {transform_indices = @transform_4, window_bounds = array<i64: 1, 128>}, {transform_indices = @transform_5, window_bounds = array<i64: 16, 128>}]} {
    %c0_i32 = arith.constant 0 : i32
    %0 = arith.cmpi eq, %arg2, %c0_i32 : i32
    %1 = arith.extui %0 : i1 to i32
    %c0_i32_0 = arith.constant 0 : i32
    %2 = arith.cmpi ne, %1, %c0_i32_0 : i32
    scf.if %2 {
      %cst_10 = arith.constant 0.000000e+00 : f32
      %12 = vector.broadcast %cst_10 : f32 to vector<16x128xf32>
      %c0_11 = arith.constant 0 : index
      %c0_12 = arith.constant 0 : index
      %13 = vector.load %arg9[%c0_11, %c0_12] : memref<16x128xf32, #tpu.memory_space<vmem>>, vector<16x128xf32>
      tpu.vector_store %arg9[%c0_11, %c0_12], %12 {strides = array<i32>} : memref<16x128xf32, #tpu.memory_space<vmem>>, vector<16x128xf32>,
    } else {
    }
    %c0 = arith.constant 0 : index
    %c0_1 = arith.constant 0 : index
    %3 = vector.load %arg9[%c0, %c0_1] : memref<16x128xf32, #tpu.memory_space<vmem>>, vector<16x128xf32>
    %c0_2 = arith.constant 0 : index
    %c0_3 = arith.constant 0 : index
    %4 = vector.load %arg3[%c0_2, %c0_3] : memref<16x128xf32, #tpu.memory_space<vmem>>, vector<16x128xf32>
    %c0_4 = arith.constant 0 : index
    %c0_5 = arith.constant 0 : index
    %5 = vector.load %arg4[%c0_4, %c0_5] : memref<128x128xf32, #tpu.memory_space<vmem>>, vector<128x128xf32>
    %cst = arith.constant dense<0.000000e+00> : vector<16x128xf32>
    %6 = tpu.matmul %4, %5, %cst {dimension_numbers = #tpu.dot_dimension_numbers<[1], [0], [0], [1], [0, 0, 1, 1], [], []>} : vector<16x128xf32>, vector<128x128xf32>, vector<16x128xf32> -> vector<16x128xf32>
    %7 = arith.addf %3, %6 : vector<16x128xf32>
    %c0_6 = arith.constant 0 : index
    %c0_7 = arith.constant 0 : index
    %8 = vector.load %arg9[%c0_6, %c0_7] : memref<16x128xf32, #tpu.memory_space<vmem>>, vector<16x128xf32>
    tpu.vector_store %arg9[%c0_6, %c0_7], %7 {strides = array<i32>} : memref<16x128xf32, #tpu.memory_space<vmem>>, vector<16x128xf32>,
    %c0_i32_8 = arith.constant 0 : i32
    %9 = arith.cmpi eq, %arg2, %c0_i32_8 : i32
    %10 = arith.extui %9 : i1 to i32
    %c0_i32_9 = arith.constant 0 : i32
    %11 = arith.cmpi ne, %10, %c0_i32_9 : i32
    scf.if %11 {
      %c0_10 = arith.constant 0 : index
      %c0_11 = arith.constant 0 : index
      %12 = vector.load %arg5[%c0_10, %c0_11] : memref<16x8xf32, #tpu.memory_space<vmem>>, vector<16x8xf32>
      %c0_12 = arith.constant 0 : index
      %c0_13 = arith.constant 0 : index
      %13 = vector.load %arg6[%c0_12, %c0_13] : memref<128x8xf32, #tpu.memory_space<vmem>>, vector<128x8xf32>
      %cst_14 = arith.constant dense<0.000000e+00> : vector<16x128xf32>
      %14 = tpu.matmul %12, %13, %cst_14 {dimension_numbers = #tpu.dot_dimension_numbers<[1], [1], [0], [0], [0, 0, 1, 0], [], []>} : vector<16x8xf32>, vector<128x8xf32>, vector<16x128xf32> -> vector<16x128xf32>
      %c0_15 = arith.constant 0 : index
      %c0_16 = arith.constant 0 : index
      %15 = vector.load %arg9[%c0_15, %c0_16] : memref<16x128xf32, #tpu.memory_space<vmem>>, vector<16x128xf32>
      %16 = arith.addf %15, %14 : vector<16x128xf32>
      %c0_17 = arith.constant 0 : index
      %c0_18 = arith.constant 0 : index
      %17 = vector.load %arg7[%c0_17, %c0_18] : memref<1x128xf32, #tpu.memory_space<vmem>>, vector<1x128xf32>
      %18 = vector.broadcast %17 : vector<1x128xf32> to vector<16x128xf32>
      %19 = arith.addf %16, %18 : vector<16x128xf32>
      %c0_19 = arith.constant 0 : index
      %c0_20 = arith.constant 0 : index
      %20 = vector.load %arg8[%c0_19, %c0_20] : memref<16x128xf32, #tpu.memory_space<vmem>>, vector<16x128xf32>
      tpu.vector_store %arg8[%c0_19, %c0_20], %19 {strides = array<i32>} : memref<16x128xf32, #tpu.memory_space<vmem>>, vector<16x128xf32>,
    } else {
    }
    return
  }
  func.func @transform_0(%arg0: i32, %arg1: i32, %arg2: i32) -> (i32, i32) {
    %c0_i32 = arith.constant 0 : i32
    return %arg0, %arg2 : i32, i32
  }
  func.func @transform_1(%arg0: i32, %arg1: i32, %arg2: i32) -> (i32, i32) {
    %c0_i32 = arith.constant 0 : i32
    return %arg2, %arg1 : i32, i32
  }
  func.func @transform_2(%arg0: i32, %arg1: i32, %arg2: i32) -> (i32, i32) {
    %c0_i32 = arith.constant 0 : i32
    %c0_i32_0 = arith.constant 0 : i32
    return %arg0, %c0_i32 : i32, i32
  }
  func.func @transform_3(%arg0: i32, %arg1: i32, %arg2: i32) -> (i32, i32) {
    %c0_i32 = arith.constant 0 : i32
    %c0_i32_0 = arith.constant 0 : i32
    return %arg1, %c0_i32 : i32, i32
  }
  func.func @transform_4(%arg0: i32, %arg1: i32, %arg2: i32) -> (i32, i32) {
    %c0_i32 = arith.constant 0 : i32
    %c0_i32_0 = arith.constant 0 : i32
    return %c0_i32, %arg1 : i32, i32
  }
  func.func @transform_5(%arg0: i32, %arg1: i32, %arg2: i32) -> (i32, i32) {
    %c0_i32 = arith.constant 0 : i32
    return %arg0, %arg1 : i32, i32
  }
}

</mosaic_0001>

<bundles_post_ra>
// kernel: tpu_custom_call.1
= control target key start
LH: loop header
LB: loop body
LE: loop exit
PB: predicated region body
PF: predicated region fallthrough
CT: control target
= control target key end

     0   :  { %vm147_vm0 = vcmask 64512   ;;  %s738_s0 = inlined_call_operand.vmem [shape: f32[16,128], index: 0, kind: input, shape index: {}]   ;;  %s739_s1 = inlined_call_operand.vmem [shape: f32[128,128], index: 1, kind: input, shape index: {}]   ;;  %s740_s2 = inlined_call_operand.vmem [shape: f32[16,8], index: 2, kind: input, shape index: {}]   ;;  %s741_s3 = inlined_call_operand.vmem [shape: f32[128,8], index: 3, kind: input, shape index: {}]   ;;  %s742_s4 = inlined_call_operand.vmem [shape: f32[1,128], index: 4, kind: input, shape index: {}]   ;;  %s743_s5 = inlined_call_operand.hbm [shape: f32[16,128], index: 5, kind: output, shape index: {}]  }
   0x1   :  { %v131_v0 = vld [vmem:[%s741_s3] sm:$0xff]  ;;  %v132_v1 = vld [vmem:[%s741_s3 + $0x8] sm:$0xff]  ;;  %v133_v2 = vld [vmem:[%s741_s3 + $0x10] sm:$0xff] }
   0x2   :  { %v465_v3 = vpack.c.bf16 %v132_v1, %v131_v0  ;;  %vm586_vm1 = vmpackc.low %vm147_vm0, %vm147_vm0  ;;  %v134_v5 = vld [vmem:[%s741_s3 + $0x18] sm:$0xff]  ;;  %v31_v7 = vld [vmem:[%s739_s1] sm:$0xff] }
   0x3   :  { %v471_v6 = vpack.c.bf16 %v134_v5, %v133_v2  ;;  %v32_v8 = vld [vmem:[%s739_s1 + $0x8] sm:$0xff]  ;;  %v33_v10 = vld [vmem:[%s739_s1 + $0x10] sm:$0xff]  ;;  %v34_v11 = vld [vmem:[%s739_s1 + $0x18] sm:$0xff] }
   0x4   :  { %467 = vmatprep.subr.msk.bf16.mxu0 %vm586_vm1, %v465_v3  ;;  %v433_v9 = vpack.c.bf16 %v32_v8, %v31_v7  ;;  %v437_v12 = vpack.c.bf16 %v34_v11, %v33_v10  ;;  %v35_v13 = vld [vmem:[%s739_s1 + $0x20] sm:$0xff]  ;;  %v36_v14 = vld [vmem:[%s739_s1 + $0x28] sm:$0xff]  ;;  %v37_v19 = vld [vmem:[%s739_s1 + $0x30] sm:$0xff] }
   0x5   :  { %470 = vmatpush3.bf16.xpose.msk.msra.mxu0 %vm586_vm1, %v465_v3  ;;  %v135_v15 = vld [vmem:[%s741_s3 + $0x20] sm:$0xff]  ;;  %v136_v16 = vld [vmem:[%s741_s3 + $0x28] sm:$0xff]  ;;  %v441_v17 = vpack.c.bf16 %v36_v14, %v35_v13  ;;  %v38_v20 = vld [vmem:[%s739_s1 + $0x38] sm:$0xff] }
   0x6   :  { %473 = vmatprep.subr.msk.bf16.mxu0 %vm586_vm1, %v471_v6  ;;  %434 = vmatprep.subr.bf16.mxu1 %v433_v9  ;;  %v477_v18 = vpack.c.bf16 %v136_v16, %v135_v15  ;;  %v29_v21 = vld [vmem:[%s738_s0] sm:$0xff]  ;;  %v445_v23 = vpack.c.bf16 %v38_v20, %v37_v19 }
   0x7   :  { %436 = vmatpush3.bf16.msra.mxu1 %v433_v9  ;;  %v129_v22 = vld [vmem:[%s740_s2] sm:$0xff] }
   0x8   :  { %438 = vmatprep.subr.bf16.mxu1 %v437_v12 }
   0xb   :  { %440 = vmatpush3.bf16.msra.mxu1 %v437_v12 }
   0xc   :  { %442 = vmatprep.subr.bf16.mxu1 %v441_v17 }
   0xd   :  { %476 = vmatpush3.bf16.xpose.msk.msra.mxu0 %vm586_vm1, %v471_v6 }
   0xe   :  { %10 = vsyncpa [#allocation4], 0  ;;  %479 = vmatprep.subr.msk.bf16.mxu0 %vm586_vm1, %v477_v18  ;;  %v39_v24 = vld [vmem:[%s739_s1 + $0x40] sm:$0xff]  ;;  %v40_v25 = vld [vmem:[%s739_s1 + $0x48] sm:$0xff]  ;;  %395 = vmatprep.mubr.f32.mxu1 %v29_v21  ;;  %s542_s14 = smov [#allocation3]  }
   0xf   :  { %v137_v26 = vld [vmem:[%s741_s3 + $0x30] sm:$0xff]  ;;  %v138_v27 = vld [vmem:[%s741_s3 + $0x38] sm:$0xff]  ;;  %430 = vmatprep.mubr.msk.f32.mxu0 %vm147_vm0, %v129_v22  ;;  %444 = vmatpush3.bf16.msra.mxu1 %v441_v17  ;;  %v449_v28 = vpack.c.bf16 %v40_v25, %v39_v24  ;;  %v43_v33 = vld [vmem:[%s739_s1 + $0x60] sm:$0xff]  ;;  %s297_s15 = sshll.u32 %s542_s14, 4  ;;  %s298_s15 = int_to_ptr.vmem [resolvable:$true] %s297_s15 }
  0x10   :  { %446 = vmatprep.subr.bf16.mxu1 %v445_v23  ;;  %v483_v29 = vpack.c.bf16 %v138_v27, %v137_v26  ;;  %v41_v30 = vld [vmem:[%s739_s1 + $0x50] sm:$0xff]  ;;  %v42_v31 = vld [vmem:[%s739_s1 + $0x58] sm:$0xff]  ;;  %v44_v34 = vld [vmem:[%s739_s1 + $0x68] sm:$0xff]  ;;  %p523_p1 = scmp.lt.s32.totalorder %s298_s15, %s298_s15 }
  0x11   :  { %v453_v32 = vpack.c.bf16 %v42_v31, %v41_v30  ;;  %v139_v35 = vld [vmem:[%s741_s3 + $0x40] sm:$0xff]  ;;  %v140_v36 = vld [vmem:[%s741_s3 + $0x48] sm:$0xff]  ;;  %v457_v37 = vpack.c.bf16 %v44_v34, %v43_v33  ;;  %v45_v39 = vld [vmem:[%s739_s1 + $0x70] sm:$0xff] }
  0x12   :  { %v489_v38 = vpack.c.bf16 %v140_v36, %v139_v35  ;;  %v46_v40 = vld [vmem:[%s739_s1 + $0x78] sm:$0xff]  ;;  %v141_v42 = vld [vmem:[%s741_s3 + $0x50] sm:$0xff]  ;;  %v30_v45 = vld [vmem:[%s738_s0 + $0x8] sm:$0xff] }
  0x13   :  { %448 = vmatpush3.bf16.msra.mxu1 %v445_v23  ;;  %v461_v41 = vpack.c.bf16 %v46_v40, %v45_v39  ;;  %v142_v43 = vld [vmem:[%s741_s3 + $0x58] sm:$0xff]  ;;  %v143_v46 = vld [vmem:[%s741_s3 + $0x60] sm:$0xff]  ;;  %v144_v47 = vld [vmem:[%s741_s3 + $0x68] sm:$0xff] }
  0x14   :  { %450 = vmatprep.subr.bf16.mxu1 %v449_v28  ;;  %v495_v44 = vpack.c.bf16 %v142_v43, %v141_v42  ;;  %v501_v48 = vpack.c.bf16 %v144_v47, %v143_v46  ;;  %v145_v49 = vld [vmem:[%s741_s3 + $0x70] sm:$0xff]  ;;  %v146_v50 = vld [vmem:[%s741_s3 + $0x78] sm:$0xff]  ;;  %v130_v52 = vld [vmem:[%s740_s2 + $0x8] sm:$0xff]  ;;  %s518_s2 = scalar_lea.vmem %s298_s15, 256 }
  0x15   :  { %482 = vmatpush3.bf16.xpose.msk.msra.mxu0 %vm586_vm1, %v477_v18  ;;  %v507_v51 = vpack.c.bf16 %v146_v50, %v145_v49  ;;  %v326_v56 = vld [vmem:[%s742_s4] ss:$0 sm:$0xff]  ;;  %p519_p0 = scmp.ne.s32.totalorder %s298_s15, %s518_s2  ;;  %p524_p2 = scmp.lt.s32.totalorder %s518_s2, %s518_s2 }
  0x16   :  { %485 = vmatprep.subr.msk.bf16.mxu0 %vm586_vm1, %v483_v29 }
  0x17   :  { %452 = vmatpush3.bf16.msra.mxu1 %v449_v28  ;;  %p525_p3 = por %p524_p2, %p523_p1 }
  0x18   :  { %454 = vmatprep.subr.bf16.mxu1 %v453_v32 }
  0x19   :  { %p526_p4 = pnand %p525_p3, %p519_p0 }
  0x1b   :  { %456 = vmatpush3.bf16.msra.mxu1 %v453_v32 }
  0x1c   :  { %458 = vmatprep.subr.bf16.mxu1 %v457_v37 }
  0x1d   :  { %488 = vmatpush3.bf16.xpose.msk.msra.mxu0 %vm586_vm1, %v483_v29 }
  0x1e   :  { %491 = vmatprep.subr.msk.bf16.mxu0 %vm586_vm1, %v489_v38 }
  0x1f   :  { %460 = vmatpush3.bf16.msra.mxu1 %v457_v37 }
  0x20   :  { %462 = vmatprep.subr.bf16.mxu1 %v461_v41 }
  0x23   :  { %464 = vmatpush3.bf16.msra.mxu1 %v461_v41 }
  0x25   :  { %494 = vmatpush3.bf16.xpose.msk.msra.mxu0 %vm586_vm1, %v489_v38 }
  0x26   :  { %497 = vmatprep.subr.msk.bf16.mxu0 %vm586_vm1, %v495_v44  ;;  %396 = vmatmul.mubr.f32.vlgmr.msra.gmra.mrb[0].mxu1 %v30_v45 }
  0x2d   :  { %500 = vmatpush3.bf16.xpose.msk.msra.mxu0 %vm586_vm1, %v495_v44 }
  0x2e   :  { %503 = vmatprep.subr.msk.bf16.mxu0 %vm586_vm1, %v501_v48 }
  0x35   :  { %506 = vmatpush3.bf16.xpose.msk.msra.mxu0 %vm586_vm1, %v501_v48 }
  0x36   :  { %509 = vmatprep.subr.msk.bf16.mxu0 %vm586_vm1, %v507_v51 }
  0x3d   :  { %512 = vmatpush3.bf16.xpose.msk.msra.mxu0 %vm586_vm1, %v507_v51 }
  0x44   :  { %431 = vmatmul.mubr.msk.f32.vlgmr.msra.gmra.mrb[0].mxu0 %vm147_vm0, %v130_v52 }
  0xf9   :  { %v397_v53 = vpop.f32.mrb[0].mxu1 }
  0xfa   :  { %v113_v54 = vpop.f32.mrb[1].mxu1 }
 0x117   :  { %v432_v55 = vpop.f32.mrb[0].mxu0 }
 0x118   :  { %v280_v57 = vadd.f32 %v432_v55, %v397_v53  ;;  %v268_v58 = vpop.f32.mrb[1].mxu0 }
 0x119   :  { %v279_v59 = vadd.f32 %v268_v58, %v113_v54 }
 0x11a   :  { %v289_v60 = vadd.f32 %v326_v56, %v280_v57 }
 0x11b   :  { %v288_v61 = vadd.f32 %v326_v56, %v279_v59 }
 0x11c   :  { %291 = vst [vmem:[#allocation3 + $0x8] sm:$0xff] %v289_v60 }
 0x11d   :  { %290 = vst [vmem:[#allocation3] sm:$0xff] %v288_v61 }
 0x11e   :  { %529 = shalt.err (!%p526_p4)
}
 0x11f   :  { %s530_s4 = scalar_lea.hbm %s743_s5, 256 }
 0x120   :  { %p531_p5 = scmp.ne.s32.totalorder %s743_s5, %s530_s4  ;;  %p534_p6 = scmp.lt.u32.totalorder %s530_s4, %s743_s5 }
 0x122   :  { %p536_p7 = pnand %p534_p6, %p531_p5 }
 0x124   :  { %539 = shalt.err (!%p536_p7)
}
 0x125   :  { %s543_s22 = smov 128   ;;  %s544_s23 = smov 8  }
 0x126   :  { %303 = dma.vmem_to_hbm [thread:$0]  %s298_s15, 256, %s743_s5, [#allocation4], %s543_s22, %s543_s22, %s544_s23  }
 0x127   :  { %540 = dma.done.wait [#allocation4], 256  }
 0x128   :  { %541 = vsyncadd [#allocation4], 4294967040 }
 0x129   :  { %307 = vsyncpa [#allocation4], 1 }

</bundles_post_ra>
